<compile_context>
chip_gen: v7x
topology: tpu7x:2x2x1
jax: 0.10.0
libtpu: 0.0.40
codegen_flags: <defaults>
</compile_context>

<pallas_src>
import jax
import jax.numpy as jnp
import numpy as np
from jax.experimental import pallas as pl
from jax.experimental.pallas import tpu as pltpu

# ----- small, self-consistent config (n_layers=1, bidirectional=True) -----
VOCAB = 50     # vocab_size
EMBED = 32     # embedding_dim
HIDDEN = 16    # hidden_dim
OUT = 4        # out_feature
BATCH = 2
SEQ = 8

H = HIDDEN
LANES = 8 * H                                  # packed gate lanes per step = 128
NVP = ((2 * VOCAB + 7) // 8) * 8               # stacked-vocab rows, padded to 104
ROW_WHH = NVP                                  # 104: recurrent weight section
ROW_WLIN = ROW_WHH + 2 * H                     # 136: output linear weight section
ROW_BLIN = ROW_WLIN + 2 * H                    # 168: output linear bias section
SLAB_ROWS = ROW_BLIN + 8                       # 176: total slab rows (8-row aligned)


# ---------------- one-time parameter packing (NOT on the hot path) ----------------
def _gate_split(w):
    """Split last dim (4H) in PyTorch gate order [i, f, g, o]."""
    return w[..., :H], w[..., H:2 * H], w[..., 2 * H:3 * H], w[..., 3 * H:4 * H]


def _pack_cols(wf, wb):
    """Pack per-direction (.., 4H) tensors into (.., 8H) column layout
       [i_f f_f o_f i_b f_b o_b g_f g_b]: one contiguous sigmoid block (6H)
       followed by one contiguous tanh block (2H)."""
    i_f, f_f, g_f, o_f = _gate_split(wf)
    i_b, f_b, g_b, o_b = _gate_split(wb)
    return jnp.concatenate([i_f, f_f, o_f, i_b, f_b, o_b, g_f, g_b], axis=-1)


def pack_params(p):
    """Fold embedding + input projection + gate biases, pack everything into one
    (SLAB_ROWS, 128) f32 slab.  Call once at init; do NOT call per forward."""
    emb = p["embedding"].astype(jnp.float32)
    # Embedding folded into the input projection, biases folded into the rows
    # (every one-hot row has exactly one fwd hit and one bwd hit, so adding the
    # per-direction bias to every row of that direction's block is exact).
    proj_f = emb @ p["wih_f"] + p["b_f"]                       # (V, 4H), torch gate order
    proj_b = emb @ p["wih_b"] + p["b_b"]                       # (V, 4H)
    zV = jnp.zeros((VOCAB, 4 * H), jnp.float32)
    emb_proj = jnp.concatenate(
        [_pack_cols(proj_f, zV),                               # rows 0:V   -> fwd columns
         _pack_cols(zV, proj_b)], axis=0)                      # rows V:2V  -> bwd columns
    emb_proj = jnp.pad(emb_proj, ((0, NVP - 2 * VOCAB), (0, 0)))          # (NVP, 128)

    zH = jnp.zeros((H, 4 * H), jnp.float32)
    whh = jnp.concatenate(
        [_pack_cols(p["whh_f"], zH),                           # rows 0:H  (h_f -> fwd cols)
         _pack_cols(zH, p["whh_b"])], axis=0)                  # rows H:2H (h_b -> bwd cols)

    w_lin = jnp.pad(p["w_lin"], ((0, 0), (0, LANES - OUT)))               # (2H, 128)
    b_lin = jnp.pad(p["b_lin"], ((0, 7), (0, LANES - OUT)))               # (8, 128), row 0 real

    slab = jnp.concatenate([emb_proj, whh, w_lin, b_lin], axis=0)         # (176, 128)
    assert slab.shape == (SLAB_ROWS, LANES)
    return slab


# ------------------------------- the kernel -------------------------------
def _word_embed_kernel(tok_ref, slab_ref, out_ref):
    # Static, 8-row-aligned views into the single parameter slab.
    emb_proj = slab_ref[0:NVP, :]                              # (104, 128) proj+bias, block-diag
    whh = slab_ref[ROW_WHH:ROW_WHH + 2 * H, :]                 # (32, 128) block-diag recurrent W
    w_lin = slab_ref[ROW_WLIN:ROW_WLIN + 2 * H, :]             # (32, 128) output weight (lane-padded)
    b_lin = slab_ref[ROW_BLIN:ROW_BLIN + 1, :]                 # (1, 128) output bias (lane-padded)

    TB = SEQ * BATCH
    # Exact embedding lookup + input projection as ONE one-hot matmul on the MXU.
    # tok column 0 = fwd id at time t; column 1 = (T-1-t) id + VOCAB (bwd block).
    lane = jax.lax.broadcasted_iota(jnp.int32, (TB, NVP), 1)
    onehot = jnp.logical_or(tok_ref[:, 0:1] == lane,
                            tok_ref[:, 1:2] == lane).astype(jnp.float32)
    proj = jnp.dot(onehot, emb_proj, preferred_element_type=jnp.float32)   # (TB, 128)

    h = jnp.zeros((BATCH, 2 * H), jnp.float32)     # [h_fwd | h_bwd], lane-packed for the matmul
    c_f = jnp.zeros((BATCH, H), jnp.float32)       # cell states carried separately (no concat)
    c_b = jnp.zeros((BATCH, H), jnp.float32)

    # Fully unrolled T=8 recurrence; one fused (B,2H)@(2H,8H) matmul per step.
    # TODO(synk): if a bundle dump shows Mosaic re-pushing the 32x128 RHS each step,
    # latch it once with pltpu.matmul_push_rhs + matmul_acc_lhs/matmul_pop per step
    # (and on v7x init the MRB accumulator with the proj slice); kept as jnp.dot here
    # for portability/compile robustness.
    for t in range(SEQ):
        rec = jnp.dot(h, whh, preferred_element_type=jnp.float32)          # (B, 128)
        gates = proj[t * BATCH:(t + 1) * BATCH, :] + rec                   # one contiguous block
        s = jax.nn.sigmoid(gates[:, :6 * H])       # [i_f f_f o_f i_b f_b o_b]
        g = jnp.tanh(gates[:, 6 * H:])             # [g_f g_b]
        c_f = s[:, H:2 * H] * c_f + s[:, :H] * g[:, :H]
        c_b = s[:, 4 * H:5 * H] * c_b + s[:, 3 * H:4 * H] * g[:, H:]
        h_f = s[:, 2 * H:3 * H] * jnp.tanh(c_f)
        h_b = s[:, 5 * H:6 * H] * jnp.tanh(c_b)
        h = jnp.concatenate([h_f, h_b], axis=-1)

    # `h` == concat(final fwd hidden, final bwd hidden) == cat(hidden[-2], hidden[-1]).
    # TODO(synk): nn.Dropout on `hidden` is identity in eval mode; no randomness emitted.
    logits = jnp.dot(h, w_lin, preferred_element_type=jnp.float32) + b_lin
    out_ref[...] = jax.nn.sigmoid(logits[:, :OUT])  # (B, OUT); tiny masked store, negligible


# ------------------------------ jitted forward ------------------------------
@jax.jit
def word_embed_forward(tokens, slab):
    """tokens: (B, T) int32 ids in [0, VOCAB); slab: packed params from pack_params."""
    B, T = tokens.shape
    TB = T * B
    # Module's torch.transpose(input, 0, 1): time-major, flattened row = t*B + b.
    tok_f = tokens.T.reshape(TB, 1)
    tok_b = tokens.T[::-1].reshape(TB, 1) + VOCAB        # time-reversed ids, bwd vocab block
    tok2 = jnp.concatenate([tok_f, tok_b], axis=-1).astype(jnp.int32)      # (TB, 2)

    vmem = pl.BlockSpec(memory_space=pltpu.MemorySpace.VMEM)   # whole arrays resident in VMEM
    # TODO(synk): if batch/seq ever scale, add a batch grid with
    # dimension_semantics=("parallel",) to engage both v7x TensorCores.
    return pl.pallas_call(
        _word_embed_kernel,
        out_shape=jax.ShapeDtypeStruct((B, OUT), jnp.float32),
        in_specs=[vmem, vmem],
        out_specs=vmem,
    )(tok2, slab)


# ------------------------------ pure-JAX reference ------------------------------
def reference_forward(tokens, p):
    """Pure-JAX reference matching PyTorch semantics (eval mode), canonical [i,f,g,o] weights."""
    x = jnp.take(p["embedding"], tokens.T, axis=0)   # (T, B, E)
    B = tokens.shape[0]

    def run(xs, wih, whh, b):
        def step(carry, xt):
            h, c = carry
            g = xt @ wih + h @ whh + b
            i = jax.nn.sigmoid(g[:, :H])
            f = jax.nn.sigmoid(g[:, H:2 * H])
            gg = jnp.tanh(g[:, 2 * H:3 * H])
            o = jax.nn.sigmoid(g[:, 3 * H:])
            c = f * c + i * gg
            h = o * jnp.tanh(c)
            return (h, c), None
        init = (jnp.zeros((B, H), jnp.float32), jnp.zeros((B, H), jnp.float32))
        (h, _), _ = jax.lax.scan(step, init, xs)
        return h

    hf = run(x, p["wih_f"], p["whh_f"], p["b_f"])
    hb = run(x[::-1], p["wih_b"], p["whh_b"], p["b_b"])
    hidden = jnp.concatenate([hf, hb], axis=1)
    return jax.nn.sigmoid(hidden @ p["w_lin"] + p["b_lin"])


def init_params(key):
    ks = jax.random.split(key, 10)
    s = 0.1
    return {
        "embedding": jax.random.normal(ks[0], (VOCAB, EMBED), jnp.float32),   # "pretrained_weight"
        # LSTM weights stored pre-transposed (in, 4H), PyTorch gate order [i, f, g, o].
        "wih_f": s * jax.random.normal(ks[1], (EMBED, 4 * H), jnp.float32),
        "whh_f": s * jax.random.normal(ks[2], (H, 4 * H), jnp.float32),
        "b_f":   s * jax.random.normal(ks[3], (1, 4 * H), jnp.float32),       # b_ih + b_hh combined
        "wih_b": s * jax.random.normal(ks[4], (EMBED, 4 * H), jnp.float32),
        "whh_b": s * jax.random.normal(ks[5], (H, 4 * H), jnp.float32),
        "b_b":   s * jax.random.normal(ks[6], (1, 4 * H), jnp.float32),
        "w_lin": s * jax.random.normal(ks[7], (2 * H, OUT), jnp.float32),
        "b_lin": s * jax.random.normal(ks[8], (1, OUT), jnp.float32),
    }


if __name__ == "__main__":
    key = jax.random.PRNGKey(0)
    k_par, k_tok = jax.random.split(key)
    params = init_params(k_par)
    tokens = jax.random.randint(k_tok, (BATCH, SEQ), 0, VOCAB, dtype=jnp.int32)

    slab = jax.block_until_ready(pack_params(params))   # one-time packing, off the hot path

    out = jax.block_until_ready(word_embed_forward(tokens, slab))

    ref = jax.block_until_ready(reference_forward(tokens, params))
    np.testing.assert_allclose(np.asarray(out), np.asarray(ref), rtol=1e-5, atol=1e-4)

    print("KERNEL_OK")
</pallas_src>

<mosaic_0001>
module attributes {stable_mosaic.version = 11 : i64} {
  func.func @_word_embed_kernel(%arg0: memref<16x2xi32, #tpu.memory_space<vmem>>, %arg1: memref<176x128xf32, #tpu.memory_space<vmem>>, %arg2: memref<2x4xf32, #tpu.memory_space<vmem>>) attributes {dimension_semantics = [], scalar_prefetch = 0 : i64, scratch_operands = 0 : i64, tpu.core_type = #tpu.core_type<tc>} {
    %c0 = arith.constant 0 : index
    %c0_0 = arith.constant 0 : index
    %0 = vector.load %arg1[%c0, %c0_0] : memref<176x128xf32, #tpu.memory_space<vmem>>, vector<104x128xf32>
    %c104 = arith.constant 104 : index
    %c0_1 = arith.constant 0 : index
    %1 = vector.load %arg1[%c104, %c0_1] : memref<176x128xf32, #tpu.memory_space<vmem>>, vector<32x128xf32>
    %c136 = arith.constant 136 : index
    %c0_2 = arith.constant 0 : index
    %2 = vector.load %arg1[%c136, %c0_2] : memref<176x128xf32, #tpu.memory_space<vmem>>, vector<32x128xf32>
    %c168 = arith.constant 168 : index
    %c0_3 = arith.constant 0 : index
    %3 = vector.load %arg1[%c168, %c0_3] : memref<176x128xf32, #tpu.memory_space<vmem>>, vector<1x128xf32>
    %4 = tpu.iota {dimensions = array<i32: 1>} : vector<16x104xi32>
    %c0_4 = arith.constant 0 : index
    %c0_5 = arith.constant 0 : index
    %5 = vector.load %arg0[%c0_4, %c0_5] : memref<16x2xi32, #tpu.memory_space<vmem>>, vector<16x1xi32>
    %6 = vector.broadcast %5 : vector<16x1xi32> to vector<16x104xi32>
    %7 = arith.cmpi eq, %6, %4 : vector<16x104xi32>
    %c0_6 = arith.constant 0 : index
    %c1 = arith.constant 1 : index
    %8 = vector.load %arg0[%c0_6, %c1] : memref<16x2xi32, #tpu.memory_space<vmem>>, vector<16x1xi32>
    %9 = vector.broadcast %8 : vector<16x1xi32> to vector<16x104xi32>
    %10 = arith.cmpi eq, %9, %4 : vector<16x104xi32>
    %11 = arith.ori %7, %10 : vector<16x104xi1>
    %12 = arith.extui %11 : vector<16x104xi1> to vector<16x104xi32>
    %13 = arith.sitofp %12 : vector<16x104xi32> to vector<16x104xf32>
    %cst = arith.constant dense<0.000000e+00> : vector<16x128xf32>
    %14 = tpu.matmul %13, %0, %cst {dimension_numbers = #tpu.dot_dimension_numbers<[1], [0], [0], [1], [0, 0, 1, 1], [], []>} : vector<16x104xf32>, vector<104x128xf32>, vector<16x128xf32> -> vector<16x128xf32>
    %cst_7 = arith.constant 0.000000e+00 : f32
    %15 = vector.broadcast %cst_7 : f32 to vector<2x32xf32>
    %cst_8 = arith.constant 0.000000e+00 : f32
    %16 = vector.broadcast %cst_8 : f32 to vector<2x16xf32>
    %cst_9 = arith.constant 0.000000e+00 : f32
    %17 = vector.broadcast %cst_9 : f32 to vector<2x16xf32>
    %cst_10 = arith.constant dense<0.000000e+00> : vector<2x128xf32>
    %18 = tpu.matmul %15, %1, %cst_10 {dimension_numbers = #tpu.dot_dimension_numbers<[1], [0], [0], [1], [0, 0, 1, 1], [], []>} : vector<2x32xf32>, vector<32x128xf32>, vector<2x128xf32> -> vector<2x128xf32>
    %19 = vector.extract_strided_slice %14 {offsets = [0, 0], sizes = [2, 128], strides = [1, 1]} : vector<16x128xf32> to vector<2x128xf32>
    %20 = arith.addf %19, %18 : vector<2x128xf32>
    %21 = vector.extract_strided_slice %20 {offsets = [0, 0], sizes = [2, 96], strides = [1, 1]} : vector<2x128xf32> to vector<2x96xf32>
    %22 = arith.negf %21 : vector<2x96xf32>
    %23 = math.exp %22 : vector<2x96xf32>
    %cst_11 = arith.constant 1.000000e+00 : f32
    %24 = vector.broadcast %cst_11 : f32 to vector<2x96xf32>
    %25 = arith.addf %24, %23 : vector<2x96xf32>
    %26 = arith.divf %24, %25 : vector<2x96xf32>
    %27 = vector.extract_strided_slice %20 {offsets = [0, 96], sizes = [2, 32], strides = [1, 1]} : vector<2x128xf32> to vector<2x32xf32>
    %28 = math.tanh %27 : vector<2x32xf32>
    %29 = vector.extract_strided_slice %26 {offsets = [0, 16], sizes = [2, 16], strides = [1, 1]} : vector<2x96xf32> to vector<2x16xf32>
    %30 = arith.mulf %29, %16 : vector<2x16xf32>
    %31 = vector.extract_strided_slice %26 {offsets = [0, 0], sizes = [2, 16], strides = [1, 1]} : vector<2x96xf32> to vector<2x16xf32>
    %32 = vector.extract_strided_slice %28 {offsets = [0, 0], sizes = [2, 16], strides = [1, 1]} : vector<2x32xf32> to vector<2x16xf32>
    %33 = arith.mulf %31, %32 : vector<2x16xf32>
    %34 = arith.addf %30, %33 : vector<2x16xf32>
    %35 = vector.extract_strided_slice %26 {offsets = [0, 64], sizes = [2, 16], strides = [1, 1]} : vector<2x96xf32> to vector<2x16xf32>
    %36 = arith.mulf %35, %17 : vector<2x16xf32>
    %37 = vector.extract_strided_slice %26 {offsets = [0, 48], sizes = [2, 16], strides = [1, 1]} : vector<2x96xf32> to vector<2x16xf32>
    %38 = vector.extract_strided_slice %28 {offsets = [0, 16], sizes = [2, 16], strides = [1, 1]} : vector<2x32xf32> to vector<2x16xf32>
    %39 = arith.mulf %37, %38 : vector<2x16xf32>
    %40 = arith.addf %36, %39 : vector<2x16xf32>
    %41 = vector.extract_strided_slice %26 {offsets = [0, 32], sizes = [2, 16], strides = [1, 1]} : vector<2x96xf32> to vector<2x16xf32>
    %42 = math.tanh %34 : vector<2x16xf32>
    %43 = arith.mulf %41, %42 : vector<2x16xf32>
    %44 = vector.extract_strided_slice %26 {offsets = [0, 80], sizes = [2, 16], strides = [1, 1]} : vector<2x96xf32> to vector<2x16xf32>
    %45 = math.tanh %40 : vector<2x16xf32>
    %46 = arith.mulf %44, %45 : vector<2x16xf32>
    %47 = tpu.concatenate %43, %46 in 1 : vector<2x16xf32>, vector<2x16xf32> -> vector<2x32xf32>
    %cst_12 = arith.constant dense<0.000000e+00> : vector<2x128xf32>
    %48 = tpu.matmul %47, %1, %cst_12 {dimension_numbers = #tpu.dot_dimension_numbers<[1], [0], [0], [1], [0, 0, 1, 1], [], []>} : vector<2x32xf32>, vector<32x128xf32>, vector<2x128xf32> -> vector<2x128xf32>
    %49 = vector.extract_strided_slice %14 {offsets = [2, 0], sizes = [2, 128], strides = [1, 1]} : vector<16x128xf32> to vector<2x128xf32>
    %50 = arith.addf %49, %48 : vector<2x128xf32>
    %51 = vector.extract_strided_slice %50 {offsets = [0, 0], sizes = [2, 96], strides = [1, 1]} : vector<2x128xf32> to vector<2x96xf32>
    %52 = arith.negf %51 : vector<2x96xf32>
    %53 = math.exp %52 : vector<2x96xf32>
    %cst_13 = arith.constant 1.000000e+00 : f32
    %54 = vector.broadcast %cst_13 : f32 to vector<2x96xf32>
    %55 = arith.addf %54, %53 : vector<2x96xf32>
    %56 = arith.divf %54, %55 : vector<2x96xf32>
    %57 = vector.extract_strided_slice %50 {offsets = [0, 96], sizes = [2, 32], strides = [1, 1]} : vector<2x128xf32> to vector<2x32xf32>
    %58 = math.tanh %57 : vector<2x32xf32>
    %59 = vector.extract_strided_slice %56 {offsets = [0, 16], sizes = [2, 16], strides = [1, 1]} : vector<2x96xf32> to vector<2x16xf32>
    %60 = arith.mulf %59, %34 : vector<2x16xf32>
    %61 = vector.extract_strided_slice %56 {offsets = [0, 0], sizes = [2, 16], strides = [1, 1]} : vector<2x96xf32> to vector<2x16xf32>
    %62 = vector.extract_strided_slice %58 {offsets = [0, 0], sizes = [2, 16], strides = [1, 1]} : vector<2x32xf32> to vector<2x16xf32>
    %63 = arith.mulf %61, %62 : vector<2x16xf32>
    %64 = arith.addf %60, %63 : vector<2x16xf32>
    %65 = vector.extract_strided_slice %56 {offsets = [0, 64], sizes = [2, 16], strides = [1, 1]} : vector<2x96xf32> to vector<2x16xf32>
    %66 = arith.mulf %65, %40 : vector<2x16xf32>
    %67 = vector.extract_strided_slice %56 {offsets = [0, 48], sizes = [2, 16], strides = [1, 1]} : vector<2x96xf32> to vector<2x16xf32>
    %68 = vector.extract_strided_slice %58 {offsets = [0, 16], sizes = [2, 16], strides = [1, 1]} : vector<2x32xf32> to vector<2x16xf32>
    %69 = arith.mulf %67, %68 : vector<2x16xf32>
    %70 = arith.addf %66, %69 : vector<2x16xf32>
    %71 = vector.extract_strided_slice %56 {offsets = [0, 32], sizes = [2, 16], strides = [1, 1]} : vector<2x96xf32> to vector<2x16xf32>
    %72 = math.tanh %64 : vector<2x16xf32>
    %73 = arith.mulf %71, %72 : vector<2x16xf32>
    %74 = vector.extract_strided_slice %56 {offsets = [0, 80], sizes = [2, 16], strides = [1, 1]} : vector<2x96xf32> to vector<2x16xf32>
    %75 = math.tanh %70 : vector<2x16xf32>
    %76 = arith.mulf %74, %75 : vector<2x16xf32>
    %77 = tpu.concatenate %73, %76 in 1 : vector<2x16xf32>, vector<2x16xf32> -> vector<2x32xf32>
    %cst_14 = arith.constant dense<0.000000e+00> : vector<2x128xf32>
    %78 = tpu.matmul %77, %1, %cst_14 {dimension_numbers = #tpu.dot_dimension_numbers<[1], [0], [0], [1], [0, 0, 1, 1], [], []>} : vector<2x32xf32>, vector<32x128xf32>, vector<2x128xf32> -> vector<2x128xf32>
    %79 = vector.extract_strided_slice %14 {offsets = [4, 0], sizes = [2, 128], strides = [1, 1]} : vector<16x128xf32> to vector<2x128xf32>
    %80 = arith.addf %79, %78 : vector<2x128xf32>
    %81 = vector.extract_strided_slice %80 {offsets = [0, 0], sizes = [2, 96], strides = [1, 1]} : vector<2x128xf32> to vector<2x96xf32>
    %82 = arith.negf %81 : vector<2x96xf32>
    %83 = math.exp %82 : vector<2x96xf32>
    %cst_15 = arith.constant 1.000000e+00 : f32
    %84 = vector.broadcast %cst_15 : f32 to vector<2x96xf32>
    %85 = arith.addf %84, %83 : vector<2x96xf32>
    %86 = arith.divf %84, %85 : vector<2x96xf32>
    %87 = vector.extract_strided_slice %80 {offsets = [0, 96], sizes = [2, 32], strides = [1, 1]} : vector<2x128xf32> to vector<2x32xf32>
    %88 = math.tanh %87 : vector<2x32xf32>
    %89 = vector.extract_strided_slice %86 {offsets = [0, 16], sizes = [2, 16], strides = [1, 1]} : vector<2x96xf32> to vector<2x16xf32>
    %90 = arith.mulf %89, %64 : vector<2x16xf32>
    %91 = vector.extract_strided_slice %86 {offsets = [0, 0], sizes = [2, 16], strides = [1, 1]} : vector<2x96xf32> to vector<2x16xf32>
    %92 = vector.extract_strided_slice %88 {offsets = [0, 0], sizes = [2, 16], strides = [1, 1]} : vector<2x32xf32> to vector<2x16xf32>
    %93 = arith.mulf %91, %92 : vector<2x16xf32>
    %94 = arith.addf %90, %93 : vector<2x16xf32>
    %95 = vector.extract_strided_slice %86 {offsets = [0, 64], sizes = [2, 16], strides = [1, 1]} : vector<2x96xf32> to vector<2x16xf32>
    %96 = arith.mulf %95, %70 : vector<2x16xf32>
    %97 = vector.extract_strided_slice %86 {offsets = [0, 48], sizes = [2, 16], strides = [1, 1]} : vector<2x96xf32> to vector<2x16xf32>
    %98 = vector.extract_strided_slice %88 {offsets = [0, 16], sizes = [2, 16], strides = [1, 1]} : vector<2x32xf32> to vector<2x16xf32>
    %99 = arith.mulf %97, %98 : vector<2x16xf32>
    %100 = arith.addf %96, %99 : vector<2x16xf32>
    %101 = vector.extract_strided_slice %86 {offsets = [0, 32], sizes = [2, 16], strides = [1, 1]} : vector<2x96xf32> to vector<2x16xf32>
    %102 = math.tanh %94 : vector<2x16xf32>
    %103 = arith.mulf %101, %102 : vector<2x16xf32>
    %104 = vector.extract_strided_slice %86 {offsets = [0, 80], sizes = [2, 16], strides = [1, 1]} : vector<2x96xf32> to vector<2x16xf32>
    %105 = math.tanh %100 : vector<2x16xf32>
    %106 = arith.mulf %104, %105 : vector<2x16xf32>
    %107 = tpu.concatenate %103, %106 in 1 : vector<2x16xf32>, vector<2x16xf32> -> vector<2x32xf32>
    %cst_16 = arith.constant dense<0.000000e+00> : vector<2x128xf32>
    %108 = tpu.matmul %107, %1, %cst_16 {dimension_numbers = #tpu.dot_dimension_numbers<[1], [0], [0], [1], [0, 0, 1, 1], [], []>} : vector<2x32xf32>, vector<32x128xf32>, vector<2x128xf32> -> vector<2x128xf32>
    %109 = vector.extract_strided_slice %14 {offsets = [6, 0], sizes = [2, 128], strides = [1, 1]} : vector<16x128xf32> to vector<2x128xf32>
    %110 = arith.addf %109, %108 : vector<2x128xf32>
    %111 = vector.extract_strided_slice %110 {offsets = [0, 0], sizes = [2, 96], strides = [1, 1]} : vector<2x128xf32> to vector<2x96xf32>
    %112 = arith.negf %111 : vector<2x96xf32>
    %113 = math.exp %112 : vector<2x96xf32>
    %cst_17 = arith.constant 1.000000e+00 : f32
    %114 = vector.broadcast %cst_17 : f32 to vector<2x96xf32>
    %115 = arith.addf %114, %113 : vector<2x96xf32>
    %116 = arith.divf %114, %115 : vector<2x96xf32>
    %117 = vector.extract_strided_slice %110 {offsets = [0, 96], sizes = [2, 32], strides = [1, 1]} : vector<2x128xf32> to vector<2x32xf32>
    %118 = math.tanh %117 : vector<2x32xf32>
    %119 = vector.extract_strided_slice %116 {offsets = [0, 16], sizes = [2, 16], strides = [1, 1]} : vector<2x96xf32> to vector<2x16xf32>
    %120 = arith.mulf %119, %94 : vector<2x16xf32>
    %121 = vector.extract_strided_slice %116 {offsets = [0, 0], sizes = [2, 16], strides = [1, 1]} : vector<2x96xf32> to vector<2x16xf32>
    %122 = vector.extract_strided_slice %118 {offsets = [0, 0], sizes = [2, 16], strides = [1, 1]} : vector<2x32xf32> to vector<2x16xf32>
    %123 = arith.mulf %121, %122 : vector<2x16xf32>
    %124 = arith.addf %120, %123 : vector<2x16xf32>
    %125 = vector.extract_strided_slice %116 {offsets = [0, 64], sizes = [2, 16], strides = [1, 1]} : vector<2x96xf32> to vector<2x16xf32>
    %126 = arith.mulf %125, %100 : vector<2x16xf32>
    %127 = vector.extract_strided_slice %116 {offsets = [0, 48], sizes = [2, 16], strides = [1, 1]} : vector<2x96xf32> to vector<2x16xf32>
    %128 = vector.extract_strided_slice %118 {offsets = [0, 16], sizes = [2, 16], strides = [1, 1]} : vector<2x32xf32> to vector<2x16xf32>
    %129 = arith.mulf %127, %128 : vector<2x16xf32>
    %130 = arith.addf %126, %129 : vector<2x16xf32>
    %131 = vector.extract_strided_slice %116 {offsets = [0, 32], sizes = [2, 16], strides = [1, 1]} : vector<2x96xf32> to vector<2x16xf32>
    %132 = math.tanh %124 : vector<2x16xf32>
    %133 = arith.mulf %131, %132 : vector<2x16xf32>
    %134 = vector.extract_strided_slice %116 {offsets = [0, 80], sizes = [2, 16], strides = [1, 1]} : vector<2x96xf32> to vector<2x16xf32>
    %135 = math.tanh %130 : vector<2x16xf32>
    %136 = arith.mulf %134, %135 : vector<2x16xf32>
    %137 = tpu.concatenate %133, %136 in 1 : vector<2x16xf32>, vector<2x16xf32> -> vector<2x32xf32>
    %cst_18 = arith.constant dense<0.000000e+00> : vector<2x128xf32>
    %138 = tpu.matmul %137, %1, %cst_18 {dimension_numbers = #tpu.dot_dimension_numbers<[1], [0], [0], [1], [0, 0, 1, 1], [], []>} : vector<2x32xf32>, vector<32x128xf32>, vector<2x128xf32> -> vector<2x128xf32>
    %139 = vector.extract_strided_slice %14 {offsets = [8, 0], sizes = [2, 128], strides = [1, 1]} : vector<16x128xf32> to vector<2x128xf32>
    %140 = arith.addf %139, %138 : vector<2x128xf32>
    %141 = vector.extract_strided_slice %140 {offsets = [0, 0], sizes = [2, 96], strides = [1, 1]} : vector<2x128xf32> to vector<2x96xf32>
    %142 = arith.negf %141 : vector<2x96xf32>
    %143 = math.exp %142 : vector<2x96xf32>
    %cst_19 = arith.constant 1.000000e+00 : f32
    %144 = vector.broadcast %cst_19 : f32 to vector<2x96xf32>
    %145 = arith.addf %144, %143 : vector<2x96xf32>
    %146 = arith.divf %144, %145 : vector<2x96xf32>
    %147 = vector.extract_strided_slice %140 {offsets = [0, 96], sizes = [2, 32], strides = [1, 1]} : vector<2x128xf32> to vector<2x32xf32>
    %148 = math.tanh %147 : vector<2x32xf32>
    %149 = vector.extract_strided_slice %146 {offsets = [0, 16], sizes = [2, 16], strides = [1, 1]} : vector<2x96xf32> to vector<2x16xf32>
    %150 = arith.mulf %149, %124 : vector<2x16xf32>
    %151 = vector.extract_strided_slice %146 {offsets = [0, 0], sizes = [2, 16], strides = [1, 1]} : vector<2x96xf32> to vector<2x16xf32>
    %152 = vector.extract_strided_slice %148 {offsets = [0, 0], sizes = [2, 16], strides = [1, 1]} : vector<2x32xf32> to vector<2x16xf32>
    %153 = arith.mulf %151, %152 : vector<2x16xf32>
    %154 = arith.addf %150, %153 : vector<2x16xf32>
    %155 = vector.extract_strided_slice %146 {offsets = [0, 64], sizes = [2, 16], strides = [1, 1]} : vector<2x96xf32> to vector<2x16xf32>
    %156 = arith.mulf %155, %130 : vector<2x16xf32>
    %157 = vector.extract_strided_slice %146 {offsets = [0, 48], sizes = [2, 16], strides = [1, 1]} : vector<2x96xf32> to vector<2x16xf32>
    %158 = vector.extract_strided_slice %148 {offsets = [0, 16], sizes = [2, 16], strides = [1, 1]} : vector<2x32xf32> to vector<2x16xf32>
    %159 = arith.mulf %157, %158 : vector<2x16xf32>
    %160 = arith.addf %156, %159 : vector<2x16xf32>
    %161 = vector.extract_strided_slice %146 {offsets = [0, 32], sizes = [2, 16], strides = [1, 1]} : vector<2x96xf32> to vector<2x16xf32>
    %162 = math.tanh %154 : vector<2x16xf32>
    %163 = arith.mulf %161, %162 : vector<2x16xf32>
    %164 = vector.extract_strided_slice %146 {offsets = [0, 80], sizes = [2, 16], strides = [1, 1]} : vector<2x96xf32> to vector<2x16xf32>
    %165 = math.tanh %160 : vector<2x16xf32>
    %166 = arith.mulf %164, %165 : vector<2x16xf32>
    %167 = tpu.concatenate %163, %166 in 1 : vector<2x16xf32>, vector<2x16xf32> -> vector<2x32xf32>
    %cst_20 = arith.constant dense<0.000000e+00> : vector<2x128xf32>
    %168 = tpu.matmul %167, %1, %cst_20 {dimension_numbers = #tpu.dot_dimension_numbers<[1], [0], [0], [1], [0, 0, 1, 1], [], []>} : vector<2x32xf32>, vector<32x128xf32>, vector<2x128xf32> -> vector<2x128xf32>
    %169 = vector.extract_strided_slice %14 {offsets = [10, 0], sizes = [2, 128], strides = [1, 1]} : vector<16x128xf32> to vector<2x128xf32>
    %170 = arith.addf %169, %168 : vector<2x128xf32>
    %171 = vector.extract_strided_slice %170 {offsets = [0, 0], sizes = [2, 96], strides = [1, 1]} : vector<2x128xf32> to vector<2x96xf32>
    %172 = arith.negf %171 : vector<2x96xf32>
    %173 = math.exp %172 : vector<2x96xf32>
    %cst_21 = arith.constant 1.000000e+00 : f32
    %174 = vector.broadcast %cst_21 : f32 to vector<2x96xf32>
    %175 = arith.addf %174, %173 : vector<2x96xf32>
    %176 = arith.divf %174, %175 : vector<2x96xf32>
    %177 = vector.extract_strided_slice %170 {offsets = [0, 96], sizes = [2, 32], strides = [1, 1]} : vector<2x128xf32> to vector<2x32xf32>
    %178 = math.tanh %177 : vector<2x32xf32>
    %179 = vector.extract_strided_slice %176 {offsets = [0, 16], sizes = [2, 16], strides = [1, 1]} : vector<2x96xf32> to vector<2x16xf32>
    %180 = arith.mulf %179, %154 : vector<2x16xf32>
    %181 = vector.extract_strided_slice %176 {offsets = [0, 0], sizes = [2, 16], strides = [1, 1]} : vector<2x96xf32> to vector<2x16xf32>
    %182 = vector.extract_strided_slice %178 {offsets = [0, 0], sizes = [2, 16], strides = [1, 1]} : vector<2x32xf32> to vector<2x16xf32>
    %183 = arith.mulf %181, %182 : vector<2x16xf32>
    %184 = arith.addf %180, %183 : vector<2x16xf32>
    %185 = vector.extract_strided_slice %176 {offsets = [0, 64], sizes = [2, 16], strides = [1, 1]} : vector<2x96xf32> to vector<2x16xf32>
    %186 = arith.mulf %185, %160 : vector<2x16xf32>
    %187 = vector.extract_strided_slice %176 {offsets = [0, 48], sizes = [2, 16], strides = [1, 1]} : vector<2x96xf32> to vector<2x16xf32>
    %188 = vector.extract_strided_slice %178 {offsets = [0, 16], sizes = [2, 16], strides = [1, 1]} : vector<2x32xf32> to vector<2x16xf32>
    %189 = arith.mulf %187, %188 : vector<2x16xf32>
    %190 = arith.addf %186, %189 : vector<2x16xf32>
    %191 = vector.extract_strided_slice %176 {offsets = [0, 32], sizes = [2, 16], strides = [1, 1]} : vector<2x96xf32> to vector<2x16xf32>
    %192 = math.tanh %184 : vector<2x16xf32>
    %193 = arith.mulf %191, %192 : vector<2x16xf32>
    %194 = vector.extract_strided_slice %176 {offsets = [0, 80], sizes = [2, 16], strides = [1, 1]} : vector<2x96xf32> to vector<2x16xf32>
    %195 = math.tanh %190 : vector<2x16xf32>
    %196 = arith.mulf %194, %195 : vector<2x16xf32>
    %197 = tpu.concatenate %193, %196 in 1 : vector<2x16xf32>, vector<2x16xf32> -> vector<2x32xf32>
    %cst_22 = arith.constant dense<0.000000e+00> : vector<2x128xf32>
    %198 = tpu.matmul %197, %1, %cst_22 {dimension_numbers = #tpu.dot_dimension_numbers<[1], [0], [0], [1], [0, 0, 1, 1], [], []>} : vector<2x32xf32>, vector<32x128xf32>, vector<2x128xf32> -> vector<2x128xf32>
    %199 = vector.extract_strided_slice %14 {offsets = [12, 0], sizes = [2, 128], strides = [1, 1]} : vector<16x128xf32> to vector<2x128xf32>
    %200 = arith.addf %199, %198 : vector<2x128xf32>
    %201 = vector.extract_strided_slice %200 {offsets = [0, 0], sizes = [2, 96], strides = [1, 1]} : vector<2x128xf32> to vector<2x96xf32>
    %202 = arith.negf %201 : vector<2x96xf32>
    %203 = math.exp %202 : vector<2x96xf32>
    %cst_23 = arith.constant 1.000000e+00 : f32
    %204 = vector.broadcast %cst_23 : f32 to vector<2x96xf32>
    %205 = arith.addf %204, %203 : vector<2x96xf32>
    %206 = arith.divf %204, %205 : vector<2x96xf32>
    %207 = vector.extract_strided_slice %200 {offsets = [0, 96], sizes = [2, 32], strides = [1, 1]} : vector<2x128xf32> to vector<2x32xf32>
    %208 = math.tanh %207 : vector<2x32xf32>
    %209 = vector.extract_strided_slice %206 {offsets = [0, 16], sizes = [2, 16], strides = [1, 1]} : vector<2x96xf32> to vector<2x16xf32>
    %210 = arith.mulf %209, %184 : vector<2x16xf32>
    %211 = vector.extract_strided_slice %206 {offsets = [0, 0], sizes = [2, 16], strides = [1, 1]} : vector<2x96xf32> to vector<2x16xf32>
    %212 = vector.extract_strided_slice %208 {offsets = [0, 0], sizes = [2, 16], strides = [1, 1]} : vector<2x32xf32> to vector<2x16xf32>
    %213 = arith.mulf %211, %212 : vector<2x16xf32>
    %214 = arith.addf %210, %213 : vector<2x16xf32>
    %215 = vector.extract_strided_slice %206 {offsets = [0, 64], sizes = [2, 16], strides = [1, 1]} : vector<2x96xf32> to vector<2x16xf32>
    %216 = arith.mulf %215, %190 : vector<2x16xf32>
    %217 = vector.extract_strided_slice %206 {offsets = [0, 48], sizes = [2, 16], strides = [1, 1]} : vector<2x96xf32> to vector<2x16xf32>
    %218 = vector.extract_strided_slice %208 {offsets = [0, 16], sizes = [2, 16], strides = [1, 1]} : vector<2x32xf32> to vector<2x16xf32>
    %219 = arith.mulf %217, %218 : vector<2x16xf32>
    %220 = arith.addf %216, %219 : vector<2x16xf32>
    %221 = vector.extract_strided_slice %206 {offsets = [0, 32], sizes = [2, 16], strides = [1, 1]} : vector<2x96xf32> to vector<2x16xf32>
    %222 = math.tanh %214 : vector<2x16xf32>
    %223 = arith.mulf %221, %222 : vector<2x16xf32>
    %224 = vector.extract_strided_slice %206 {offsets = [0, 80], sizes = [2, 16], strides = [1, 1]} : vector<2x96xf32> to vector<2x16xf32>
    %225 = math.tanh %220 : vector<2x16xf32>
    %226 = arith.mulf %224, %225 : vector<2x16xf32>
    %227 = tpu.concatenate %223, %226 in 1 : vector<2x16xf32>, vector<2x16xf32> -> vector<2x32xf32>
    %cst_24 = arith.constant dense<0.000000e+00> : vector<2x128xf32>
    %228 = tpu.matmul %227, %1, %cst_24 {dimension_numbers = #tpu.dot_dimension_numbers<[1], [0], [0], [1], [0, 0, 1, 1], [], []>} : vector<2x32xf32>, vector<32x128xf32>, vector<2x128xf32> -> vector<2x128xf32>
    %229 = vector.extract_strided_slice %14 {offsets = [14, 0], sizes = [2, 128], strides = [1, 1]} : vector<16x128xf32> to vector<2x128xf32>
    %230 = arith.addf %229, %228 : vector<2x128xf32>
    %231 = vector.extract_strided_slice %230 {offsets = [0, 0], sizes = [2, 96], strides = [1, 1]} : vector<2x128xf32> to vector<2x96xf32>
    %232 = arith.negf %231 : vector<2x96xf32>
    %233 = math.exp %232 : vector<2x96xf32>
    %cst_25 = arith.constant 1.000000e+00 : f32
    %234 = vector.broadcast %cst_25 : f32 to vector<2x96xf32>
    %235 = arith.addf %234, %233 : vector<2x96xf32>
    %236 = arith.divf %234, %235 : vector<2x96xf32>
    %237 = vector.extract_strided_slice %230 {offsets = [0, 96], sizes = [2, 32], strides = [1, 1]} : vector<2x128xf32> to vector<2x32xf32>
    %238 = math.tanh %237 : vector<2x32xf32>
    %239 = vector.extract_strided_slice %236 {offsets = [0, 16], sizes = [2, 16], strides = [1, 1]} : vector<2x96xf32> to vector<2x16xf32>
    %240 = arith.mulf %239, %214 : vector<2x16xf32>
    %241 = vector.extract_strided_slice %236 {offsets = [0, 0], sizes = [2, 16], strides = [1, 1]} : vector<2x96xf32> to vector<2x16xf32>
    %242 = vector.extract_strided_slice %238 {offsets = [0, 0], sizes = [2, 16], strides = [1, 1]} : vector<2x32xf32> to vector<2x16xf32>
    %243 = arith.mulf %241, %242 : vector<2x16xf32>
    %244 = arith.addf %240, %243 : vector<2x16xf32>
    %245 = vector.extract_strided_slice %236 {offsets = [0, 64], sizes = [2, 16], strides = [1, 1]} : vector<2x96xf32> to vector<2x16xf32>
    %246 = arith.mulf %245, %220 : vector<2x16xf32>
    %247 = vector.extract_strided_slice %236 {offsets = [0, 48], sizes = [2, 16], strides = [1, 1]} : vector<2x96xf32> to vector<2x16xf32>
    %248 = vector.extract_strided_slice %238 {offsets = [0, 16], sizes = [2, 16], strides = [1, 1]} : vector<2x32xf32> to vector<2x16xf32>
    %249 = arith.mulf %247, %248 : vector<2x16xf32>
    %250 = arith.addf %246, %249 : vector<2x16xf32>
    %251 = vector.extract_strided_slice %236 {offsets = [0, 32], sizes = [2, 16], strides = [1, 1]} : vector<2x96xf32> to vector<2x16xf32>
    %252 = math.tanh %244 : vector<2x16xf32>
    %253 = arith.mulf %251, %252 : vector<2x16xf32>
    %254 = vector.extract_strided_slice %236 {offsets = [0, 80], sizes = [2, 16], strides = [1, 1]} : vector<2x96xf32> to vector<2x16xf32>
    %255 = math.tanh %250 : vector<2x16xf32>
    %256 = arith.mulf %254, %255 : vector<2x16xf32>
    %257 = tpu.concatenate %253, %256 in 1 : vector<2x16xf32>, vector<2x16xf32> -> vector<2x32xf32>
    %cst_26 = arith.constant dense<0.000000e+00> : vector<2x128xf32>
    %258 = tpu.matmul %257, %2, %cst_26 {dimension_numbers = #tpu.dot_dimension_numbers<[1], [0], [0], [1], [0, 0, 1, 1], [], []>} : vector<2x32xf32>, vector<32x128xf32>, vector<2x128xf32> -> vector<2x128xf32>
    %259 = vector.broadcast %3 : vector<1x128xf32> to vector<2x128xf32>
    %260 = arith.addf %258, %259 : vector<2x128xf32>
    %261 = vector.extract_strided_slice %260 {offsets = [0, 0], sizes = [2, 4], strides = [1, 1]} : vector<2x128xf32> to vector<2x4xf32>
    %262 = arith.negf %261 : vector<2x4xf32>
    %263 = math.exp %262 : vector<2x4xf32>
    %cst_27 = arith.constant 1.000000e+00 : f32
    %264 = vector.broadcast %cst_27 : f32 to vector<2x4xf32>
    %265 = arith.addf %264, %263 : vector<2x4xf32>
    %266 = arith.divf %264, %265 : vector<2x4xf32>
    %c0_28 = arith.constant 0 : index
    %c0_29 = arith.constant 0 : index
    %267 = vector.load %arg2[%c0_28, %c0_29] : memref<2x4xf32, #tpu.memory_space<vmem>>, vector<2x4xf32>
    tpu.vector_store %arg2[%c0_28, %c0_29], %266 {strides = array<i32>} : memref<2x4xf32, #tpu.memory_space<vmem>>, vector<2x4xf32>,
    return
  }
}

</mosaic_0001>

<bundles_post_ra>
// kernel: word_embed_forward.1
= control target key start
LH: loop header
LB: loop body
LE: loop exit
PB: predicated region body
PF: predicated region fallthrough
CT: control target
= control target key end

     0   :  { %7 = vsyncpa [#allocation3], 0  ;;  %s1953_s0 = inlined_call_operand.vmem [shape: s32[16,2], index: 0, kind: input, shape index: {}]   ;;  %s1954_s1 = inlined_call_operand.hbm [shape: f32[176,128], index: 1, kind: input, shape index: {}]   ;;  %s1955_s2 = inlined_call_operand.hbm [shape: f32[2,4], index: 2, kind: output, shape index: {}]  }
   0x1   :  { %8 = vsyncpa [#allocation4], 0  ;;  %s1744_s9 = smov [#allocation2]   ;;  %s1696_s13 = scalar_lea.hbm %s1954_s1, 2816 }
   0x2   :  { %s16_s10 = sshll.u32 %s1744_s9, 4  ;;  %p1697_p0 = scmp.ne.s32.totalorder %s1954_s1, %s1696_s13  ;;  %s17_s10 = int_to_ptr.vmem [resolvable:$true] %s16_s10 }
   0x3   :  { %p1700_p1 = scmp.lt.u32.totalorder %s1696_s13, %s1954_s1 }
   0x5   :  { %p1702_p2 = pnand %p1700_p1, %p1697_p0 }
   0x7   :  { %1705 = shalt.err (!%p1702_p2)
}
   0x8   :  { %s1706_s18 = scalar_lea.vmem %s17_s10, 2816  ;;  %p1711_p4 = scmp.lt.s32.totalorder %s17_s10, %s17_s10 }
   0x9   :  { %p1707_p3 = scmp.ne.s32.totalorder %s17_s10, %s1706_s18  ;;  %p1712_p5 = scmp.lt.s32.totalorder %s1706_s18, %s1706_s18 }
   0xb   :  { %p1713_p6 = por %p1712_p5, %p1711_p4 }
   0xd   :  { %p1714_p7 = pnand %p1713_p6, %p1707_p3 }
   0xf   :  { %1717 = shalt.err (!%p1714_p7)
}
  0x10   :  { %s1745_s19 = smov 128   ;;  %s1746_s20 = smov 8  }
  0x11   :  { %22 = dma.hbm_to_vmem [thread:$0]  %s1954_s1, 2816, %s17_s10, [#allocation3], %s1745_s19, %s1745_s19, %s1746_s20  }
  0x12   :  { %1740 = dma.done.wait [#allocation3], 2816  }
  0x13   :  { %1741 = vsyncadd [#allocation3], 4294964480  ;;  %v1747_v0 = vmov 0   ;;  %v51_v1 = vld [vmem:[%s1953_s0 + $0x8] sm:$0xff]  ;;  %v50_v2 = vld [vmem:[%s1953_s0] sm:$0xff]  ;;  %v1748_v8 = vmov 0.0|0.0   ;;  %v48_v31 = vlaneseq }
  0x14   :  { %1610 = vset.pattern.permute.xlu1 %v1747_v0  ;;  %1608 = vset.pattern.permute.xlu0 %v1747_v0  ;;  %v26_v3 = vld [vmem:[#allocation2] sm:$0xff]  ;;  %v27_v4 = vld [vmem:[#allocation2 + $0x8] sm:$0xff]  ;;  %v28_v5 = vld [vmem:[#allocation2 + $0x10] sm:$0xff]  ;;  %v1749_v13 = vmov 1   ;;  %vm1750_vm0 = vmmov 0   ;;  %v1751_v22 = vmov 0.0  }
  0x15   :  { %56 = vperm.xlu1 %1610, %v51_v1   ;;  %53 = vperm.xlu0 %1608, %v50_v2   ;;  %v29_v6 = vld [vmem:[#allocation2 + $0x18] sm:$0xff]  ;;  %v1517_v7 = vpack.c.bf16 %v27_v4, %v26_v3  ;;  %v30_v10 = vld [vmem:[#allocation2 + $0x20] sm:$0xff]  ;;  %v39_v11 = vld [vmem:[#allocation2 + $0x68] sm:$0xff]  ;;  %v49_v34 = vand.u32 127, %v48_v31  ;;  %vm74_vm6 = vcmask 850944   ;;  %s1752_s0 = smov 64  }
  0x16   :  { %1541 = vmatprep.subr.bf16.mxu1 %v1748_v8  ;;  %v1521_v9 = vpack.c.bf16 %v29_v6, %v28_v5  ;;  %v40_v12 = vld [vmem:[#allocation2 + $0x70] sm:$0xff]  ;;  %v31_v14 = vld [vmem:[#allocation2 + $0x28] sm:$0xff]  ;;  %v41_v16 = vld [vmem:[#allocation2 + $0x78] sm:$0xff]  ;;  %1426 = vmatprep.mubr.msk.f32.mxu1 %vm1750_vm0, %v1751_v22  ;;  %s1753_s1 = smov 32   ;;  %s1754_s27 = smov 16   ;;  %vm278_vm8 = vcmask 130048  }
  0x17   :  { %1518 = vmatprep.subr.bf16.mxu0 %v1517_v7  ;;  %v1791_v15 = vpack.c.bf16 %v40_v12, %v39_v11  ;;  %v42_v17 = vld [vmem:[#allocation2 + $0x80] sm:$0xff]  ;;  %v1525_v19 = vpack.c.bf16 %v31_v14, %v30_v10  ;;  %v32_v20 = vld [vmem:[#allocation2 + $0x30] sm:$0xff]  ;;  %v33_v21 = vld [vmem:[#allocation2 + $0x38] sm:$0xff]  ;;  %s1755_s28 = smov 96   ;;  %vm156_vm9 = vcmask 261120   ;;  %s1756_s29 = smov [#allocation5]  }
  0x18   :  { %1520 = vmatpush3.bf16.msra.mxu0 %v1517_v7  ;;  %v1794_v18 = vpack.c.bf16 %v42_v17, %v41_v16  ;;  %v1529_v23 = vpack.c.bf16 %v33_v21, %v32_v20  ;;  %v34_v24 = vld [vmem:[#allocation2 + $0x40] sm:$0xff]  ;;  %v35_v25 = vld [vmem:[#allocation2 + $0x48] sm:$0xff]  ;;  %v36_v27 = vld [vmem:[#allocation2 + $0x50] sm:$0xff]  ;;  %s1298_s30 = sshll.u32 %s1756_s29, 4  ;;  %vm1290_vm10 = vcmask 25600   ;;  %s1299_s30 = int_to_ptr.vmem [resolvable:$true] %s1298_s30 }
  0x19   :  { %1611 = vset.pattern.permute.xlu1 %v1749_v13  ;;  %1609 = vset.pattern.permute.xlu0 %v1749_v13  ;;  %v1533_v26 = vpack.c.bf16 %v35_v25, %v34_v24  ;;  %v37_v28 = vld [vmem:[#allocation2 + $0x58] sm:$0xff]  ;;  %v38_v30 = vld [vmem:[#allocation2 + $0x60] sm:$0xff]  ;;  %s1718_s3 = scalar_lea.vmem %s1299_s30, 32  ;;  %p1723_p9 = scmp.lt.s32.totalorder %s1299_s30, %s1299_s30 }
  0x1a   :  { %64 = vperm.xlu1 %1611, %v51_v1   ;;  %61 = vperm.xlu0 %1609, %v50_v2   ;;  %v1537_v29 = vpack.c.bf16 %v37_v28, %v36_v27  ;;  %p1719_p8 = scmp.ne.s32.totalorder %s1299_s30, %s1718_s3  ;;  %p1724_p10 = scmp.lt.s32.totalorder %s1718_s3, %s1718_s3 }
  0x1b   :  { %1543 = vmatpush3.bf16.msra.mxu1 %v1791_v15  ;;  %1522 = vmatprep.subr.bf16.mxu0 %v1521_v9 }
  0x1c   :  { %1544 = vmatprep.subr.bf16.mxu1 %v1748_v8  ;;  %1524 = vmatpush3.bf16.msra.mxu0 %v1521_v9  ;;  %p1725_p11 = por %p1724_p10, %p1723_p9 }
  0x1d   :  { %1526 = vmatprep.subr.bf16.mxu0 %v1525_v19 }
  0x1e   :  { %p1726_p12 = pnand %p1725_p11, %p1719_p8 }
  0x1f   :  { %1546 = vmatpush3.bf16.msra.mxu1 %v1794_v18 }
  0x20   :  { %1547 = vmatprep.subr.bf16.mxu1 %v1748_v8  ;;  %1528 = vmatpush3.bf16.msra.mxu0 %v1525_v19 }
  0x21   :  { %1530 = vmatprep.subr.bf16.mxu0 %v1529_v23 }
  0x22   :  { %1427 = vmatmul.mubr.f32.vlgmr.msra.gmra.mrb[0].mxu1 %v1751_v22 }
  0x23   :  { %1549 = vmatpush3.bf16.msra.mxu1 %v1791_v15  ;;  %1437 = vmatprep.mubr.msk.f32.mxu1 %vm1750_vm0, %v1751_v22 }
  0x24   :  { %1550 = vmatprep.subr.bf16.mxu1 %v1748_v8  ;;  %1532 = vmatpush3.bf16.msra.mxu0 %v1529_v23 }
  0x25   :  { %1534 = vmatprep.subr.bf16.mxu0 %v1533_v26 }
  0x27   :  { %1552 = vmatpush3.bf16.msra.mxu1 %v1794_v18 }
  0x28   :  { %1553 = vmatprep.subr.bf16.mxu1 %v1748_v8  ;;  %1536 = vmatpush3.bf16.msra.mxu0 %v1533_v26 }
  0x29   :  { %1538 = vmatprep.subr.bf16.mxu0 %v1537_v29 }
  0x2c   :  { %1540 = vmatpush3.bf16.msra.mxu0 %v1537_v29 }
  0x2d   :  { %1413 = vmatprep.subr.mxu0 %v38_v30 }
  0x30   :  { %1414 = vmatpush3.msra.mxu0 %v38_v30 }
  0x31   :  { %1565 = vmatprep.subr.bf16.mxu0 %v1748_v8 }
  0x94   :  { %v54_v32 = vpop.permute.xlu0 %53  ;;  %v57_v33 = vpop.permute.xlu1 %56 }
  0x95   :  { %vm59_vm1 = vcmp.eq.s32.totalorder %v57_v33, %v49_v34  ;;  %vm58_vm4 = vcmp.eq.s32.totalorder %v54_v32, %v49_v34 }
  0x99   :  { %v65_v35 = vpop.permute.xlu1 %64  ;;  %v62_v36 = vpop.permute.xlu0 %61 }
  0x9a   :  { %vm67_vm2 = vcmp.eq.s32.totalorder %v65_v35, %v49_v34  ;;  %vm66_vm3 = vcmp.eq.s32.totalorder %v62_v36, %v49_v34 }
  0x9b   :  { %vm69_vm5 = vmor %vm59_vm1, %vm67_vm2 }
  0x9c   :  { %v1308_v37 = vsel %vm69_vm5, 1.0, %v1751_v22  ;;  %vm68_vm7 = vmor %vm58_vm4, %vm66_vm3 }
  0x9d   :  { %v1307_v38 = vsel %vm68_vm7, 1.0, %v1751_v22 }
  0x9e   :  { %1415 = vmatprep.mubr.msk.f32.mxu0 %vm74_vm6, %v1307_v38 }
  0x9f   :  { %1416 = vmatmul.mubr.msk.f32.vlgmr.msra.gmra.mrb[0].mxu0 %vm74_vm6, %v1308_v37 }
  0xa0   :  { %1567 = vmatpush3.bf16.msra.mxu0 %v1791_v15  ;;  %1470 = vmatprep.mubr.msk.f32.mxu0 %vm1750_vm0, %v1751_v22 }
  0xa1   :  { %1568 = vmatprep.subr.bf16.mxu0 %v1748_v8 }
  0xa4   :  { %1570 = vmatpush3.bf16.msra.mxu0 %v1794_v18 }
  0xa5   :  { %1577 = vmatprep.subr.bf16.mxu0 %v1748_v8 }
  0xf5   :  { %v226_v39 = vpop.f32.mrb[0].mxu1 }
  0xf6   :  { %v1428_v40 = vpop.f32.mrb[1].mxu1 }
 0x172   :  { %v1817_v41 = vpop.f32.mrb[0].mxu0 }
 0x173   :  { %v1819_v42 = vpop.f32.mrb[1].mxu0 }
 0x174   :  { %v230_v43 = vadd.f32 %v226_v39, %v1819_v42 }
 0x176   :  { %1612 = vtanh.f32 %v230_v43  ;;  %v1311_v45 = vmul.f32 -1.442695, %v230_v43 }
 0x178   :  { %1614 = vpow2.f32 %v1311_v45 }
 0x180   :  { %v1613_v44 = vpop.eup %1612 }
 0x181   :  { %249 = vrot.lane.b32.xlu0 %v1613_v44, %s1752_s0  ;;  %240 = vrot.lane.b32.xlu1 %v1613_v44, %s1753_s1 }
 0x182   :  { %v1615_v46 = vpop.eup %1614 }
 0x183   :  { %v234_v47 = vadd.f32 1.0, %v1615_v46 }
 0x185   :  { %1616 = vrcp.f32 %v234_v47 }
 0x18f   :  { %v1617_v48 = vpop.eup %1616 }
 0x190   :  { %v238_v53 = vmul.f32 0.0, %v1617_v48 }
 0x1f3   :  { %v250_v49 = vpop.permute.xlu0 %249  ;;  %v241_v50 = vpop.permute.xlu1 %240 }
 0x1f4   :  { %v252_v51 = vmul.f32 %v1617_v48, %v250_v49  ;;  %v243_v52 = vmul.f32 %v1617_v48, %v241_v50 }
 0x1f6   :  { %254 = vrot.lane.b32.xlu0 %v252_v51, %s1754_s27  ;;  %245 = vrot.lane.b32.xlu1 %v243_v52, %s1754_s27 }
 0x268   :  { %v255_v54 = vpop.permute.xlu0 %254  ;;  %v246_v55 = vpop.permute.xlu1 %245 }
 0x269   :  { %v257_v56 = vadd.f32 %v255_v54, %v238_v53  ;;  %v248_v57 = vadd.f32 %v246_v55, %v238_v53 }
 0x26b   :  { %1618 = vtanh.f32 %v257_v56  ;;  %v379_v19 = vrot.slane %v257_v56, 6  ;;  %v365_v20 = vrot.slane %v248_v57, 6 }
 0x26c   :  { %1620 = vtanh.f32 %v248_v57 }
 0x275   :  { %v1619_v58 = vpop.eup %1618 }
 0x276   :  { %v1621_v59 = vpop.eup %1620  ;;  %266 = vrot.lane.b32.xlu0 %v1619_v58, %s1754_s27 }
 0x277   :  { %260 = vrot.lane.b32.xlu1 %v1621_v59, %s1754_s27 }
 0x2e8   :  { %v267_v60 = vpop.permute.xlu0 %266 }
 0x2e9   :  { %v269_v61 = vmul.f32 %v1617_v48, %v267_v60  ;;  %v261_v62 = vpop.permute.xlu1 %260 }
 0x2ea   :  { %v263_v63 = vmul.f32 %v1617_v48, %v261_v62 }
 0x2eb   :  { %275 = vrot.lane.b32.xlu0 %v269_v61, %s1752_s0 }
 0x2ec   :  { %271 = vrot.lane.b32.xlu1 %v263_v63, %s1755_s28 }
 0x35d   :  { %v276_v0 = vpop.permute.xlu0 %275 }
 0x35e   :  { %v272_v1 = vpop.permute.xlu1 %271 }
 0x35f   :  { %v279_v2 = vsel %vm278_vm8, %v272_v1, %v276_v0 }
 0x360   :  { %1438 = vmatmul.mubr.msk.f32.vlgmr.msra.gmra.mrb[2].mxu1 %vm156_vm9, %v279_v2 }
 0x361   :  { %1555 = vmatpush3.bf16.msra.mxu1 %v1791_v15  ;;  %1448 = vmatprep.mubr.msk.f32.mxu1 %vm1750_vm0, %v1751_v22 }
 0x362   :  { %1556 = vmatprep.subr.bf16.mxu1 %v1748_v8 }
 0x365   :  { %1558 = vmatpush3.bf16.msra.mxu1 %v1794_v18 }
 0x366   :  { %1559 = vmatprep.subr.bf16.mxu1 %v1748_v8 }
 0x433   :  { %v349_v3 = vpop.f32.mrb[2].mxu1 }
 0x434   :  { %v354_v4 = vrot.slane %v349_v3, 6  ;;  %v1439_v5 = vpop.f32.mrb[3].mxu1 }
 0x436   :  { %v356_v6 = vadd.f32 %v354_v4, %v1819_v42 }
 0x438   :  { %1622 = vtanh.f32 %v356_v6  ;;  %v1313_v9 = vmul.f32 -1.442695, %v356_v6 }
 0x43a   :  { %1624 = vpow2.f32 %v1313_v9 }
 0x442   :  { %v1623_v7 = vpop.eup %1622 }
 0x443   :  { %382 = vrot.lane.b32.xlu0 %v1623_v7, %s1752_s0  ;;  %369 = vrot.lane.b32.xlu1 %v1623_v7, %s1753_s1 }
 0x444   :  { %v1625_v10 = vpop.eup %1624 }
 0x445   :  { %v360_v11 = vadd.f32 1.0, %v1625_v10 }
 0x447   :  { %1626 = vrcp.f32 %v360_v11 }
 0x451   :  { %v1627_v12 = vpop.eup %1626 }
 0x452   :  { %v381_v21 = vmul.f32 %v1627_v12, %v379_v19  ;;  %v367_v23 = vmul.f32 %v1627_v12, %v365_v20 }
 0x4b5   :  { %v383_v13 = vpop.permute.xlu0 %382  ;;  %v370_v14 = vpop.permute.xlu1 %369 }
 0x4b6   :  { %v385_v16 = vmul.f32 %v1627_v12, %v383_v13  ;;  %v372_v17 = vmul.f32 %v1627_v12, %v370_v14 }
 0x4b8   :  { %387 = vrot.lane.b32.xlu0 %v385_v16, %s1754_s27  ;;  %374 = vrot.lane.b32.xlu1 %v372_v17, %s1754_s27 }
 0x52a   :  { %v388_v24 = vpop.permute.xlu0 %387  ;;  %v375_v25 = vpop.permute.xlu1 %374 }
 0x52b   :  { %v390_v26 = vadd.f32 %v388_v24, %v381_v21  ;;  %v377_v27 = vadd.f32 %v375_v25, %v367_v23 }
 0x52d   :  { %1628 = vtanh.f32 %v390_v26  ;;  %v512_v53 = vrot.slane %v390_v26, 6  ;;  %v498_v54 = vrot.slane %v377_v27, 6 }
 0x52e   :  { %1630 = vtanh.f32 %v377_v27 }
 0x537   :  { %v1629_v28 = vpop.eup %1628 }
 0x538   :  { %v1631_v29 = vpop.eup %1630  ;;  %399 = vrot.lane.b32.xlu0 %v1629_v28, %s1754_s27 }
 0x539   :  { %393 = vrot.lane.b32.xlu1 %v1631_v29, %s1754_s27 }
 0x5aa   :  { %v400_v30 = vpop.permute.xlu0 %399 }
 0x5ab   :  { %v402_v31 = vmul.f32 %v1627_v12, %v400_v30  ;;  %v394_v32 = vpop.permute.xlu1 %393 }
 0x5ac   :  { %v396_v33 = vmul.f32 %v1627_v12, %v394_v32 }
 0x5ad   :  { %408 = vrot.lane.b32.xlu0 %v402_v31, %s1752_s0 }
 0x5ae   :  { %404 = vrot.lane.b32.xlu1 %v396_v33, %s1755_s28 }
 0x61f   :  { %v409_v34 = vpop.permute.xlu0 %408 }
 0x620   :  { %v405_v35 = vpop.permute.xlu1 %404 }
 0x621   :  { %v411_v36 = vsel %vm278_vm8, %v405_v35, %v409_v34 }
 0x622   :  { %v413_v37 = vrot.slane %v411_v36, 2 }
 0x624   :  { %1449 = vmatmul.mubr.msk.f32.vlgmr.msra.gmra.mrb[4].mxu1 %vm156_vm9, %v413_v37 }
 0x625   :  { %1561 = vmatpush3.bf16.msra.mxu1 %v1791_v15  ;;  %1459 = vmatprep.mubr.msk.f32.mxu1 %vm1750_vm0, %v1751_v22 }
 0x626   :  { %1562 = vmatprep.subr.bf16.mxu1 %v1748_v8 }
 0x629   :  { %1564 = vmatpush3.bf16.msra.mxu1 %v1794_v18 }
 0x62a   :  { %1571 = vmatprep.subr.bf16.mxu1 %v1748_v8 }
 0x6f7   :  { %v482_v38 = vpop.f32.mrb[4].mxu1 }
 0x6f8   :  { %v487_v39 = vrot.slane %v482_v38, 4  ;;  %v1450_v40 = vpop.f32.mrb[5].mxu1 }
 0x6fa   :  { %v489_v43 = vadd.f32 %v487_v39, %v1819_v42 }
 0x6fc   :  { %1632 = vtanh.f32 %v489_v43  ;;  %v1315_v45 = vmul.f32 -1.442695, %v489_v43 }
 0x6fe   :  { %1634 = vpow2.f32 %v1315_v45 }
 0x706   :  { %v1633_v44 = vpop.eup %1632 }
 0x707   :  { %515 = vrot.lane.b32.xlu0 %v1633_v44, %s1752_s0  ;;  %502 = vrot.lane.b32.xlu1 %v1633_v44, %s1753_s1 }
 0x708   :  { %v1635_v46 = vpop.eup %1634 }
 0x709   :  { %v493_v47 = vadd.f32 1.0, %v1635_v46 }
 0x70b   :  { %1636 = vrcp.f32 %v493_v47 }
 0x715   :  { %v1637_v48 = vpop.eup %1636 }
 0x716   :  { %v514_v55 = vmul.f32 %v1637_v48, %v512_v53  ;;  %v500_v56 = vmul.f32 %v1637_v48, %v498_v54 }
 0x779   :  { %v516_v49 = vpop.permute.xlu0 %515  ;;  %v503_v50 = vpop.permute.xlu1 %502 }
 0x77a   :  { %v518_v51 = vmul.f32 %v1637_v48, %v516_v49  ;;  %v505_v52 = vmul.f32 %v1637_v48, %v503_v50 }
 0x77c   :  { %520 = vrot.lane.b32.xlu0 %v518_v51, %s1754_s27  ;;  %507 = vrot.lane.b32.xlu1 %v505_v52, %s1754_s27 }
 0x7ee   :  { %v521_v57 = vpop.permute.xlu0 %520  ;;  %v508_v58 = vpop.permute.xlu1 %507 }
 0x7ef   :  { %v523_v59 = vadd.f32 %v521_v57, %v514_v55  ;;  %v510_v60 = vadd.f32 %v508_v58, %v500_v56 }
 0x7f1   :  { %1638 = vtanh.f32 %v523_v59  ;;  %v631_v24 = vrot.slane %v510_v60, 6 }
 0x7f2   :  { %1640 = vtanh.f32 %v510_v60 }
 0x7fb   :  { %v1639_v61 = vpop.eup %1638 }
 0x7fc   :  { %v1641_v62 = vpop.eup %1640  ;;  %532 = vrot.lane.b32.xlu0 %v1639_v61, %s1754_s27 }
 0x7fd   :  { %526 = vrot.lane.b32.xlu1 %v1641_v62, %s1754_s27 }
 0x86e   :  { %v533_v63 = vpop.permute.xlu0 %532 }
 0x86f   :  { %v535_v0 = vmul.f32 %v1637_v48, %v533_v63  ;;  %v527_v1 = vpop.permute.xlu1 %526 }
 0x870   :  { %v529_v2 = vmul.f32 %v1637_v48, %v527_v1 }
 0x871   :  { %541 = vrot.lane.b32.xlu0 %v535_v0, %s1752_s0 }
 0x872   :  { %537 = vrot.lane.b32.xlu1 %v529_v2, %s1755_s28 }
 0x8e3   :  { %v542_v3 = vpop.permute.xlu0 %541 }
 0x8e4   :  { %v538_v4 = vpop.permute.xlu1 %537 }
 0x8e5   :  { %v544_v5 = vsel %vm278_vm8, %v538_v4, %v542_v3 }
 0x8e6   :  { %v546_v6 = vrot.slane %v544_v5, 4 }
 0x8e8   :  { %1460 = vmatmul.mubr.msk.f32.vlgmr.msra.gmra.mrb[6].mxu1 %vm156_vm9, %v546_v6 }
 0x8e9   :  { %1573 = vmatpush3.bf16.msra.mxu1 %v1791_v15  ;;  %1481 = vmatprep.mubr.msk.f32.mxu1 %vm1750_vm0, %v1751_v22 }
 0x8ea   :  { %1574 = vmatprep.subr.bf16.mxu1 %v1748_v8 }
 0x8ed   :  { %1576 = vmatpush3.bf16.msra.mxu1 %v1794_v18 }
 0x8ee   :  { %1583 = vmatprep.subr.bf16.mxu1 %v1748_v8 }
 0x9bb   :  { %v615_v7 = vpop.f32.mrb[6].mxu1 }
 0x9bc   :  { %v620_v9 = vrot.slane %v615_v7, 2  ;;  %v1461_v10 = vpop.f32.mrb[7].mxu1 }
 0x9be   :  { %v622_v11 = vadd.f32 %v620_v9, %v1819_v42  ;;  %v645_v42 = vrot.slane %v523_v59, 6 }
 0x9c0   :  { %1642 = vtanh.f32 %v622_v11  ;;  %v1317_v13 = vmul.f32 -1.442695, %v622_v11 }
 0x9c2   :  { %1644 = vpow2.f32 %v1317_v13 }
 0x9ca   :  { %v1643_v12 = vpop.eup %1642 }
 0x9cb   :  { %648 = vrot.lane.b32.xlu0 %v1643_v12, %s1752_s0  ;;  %635 = vrot.lane.b32.xlu1 %v1643_v12, %s1753_s1 }
 0x9cc   :  { %v1645_v14 = vpop.eup %1644 }
 0x9cd   :  { %v626_v16 = vadd.f32 1.0, %v1645_v14 }
 0x9cf   :  { %1646 = vrcp.f32 %v626_v16 }
 0x9d9   :  { %v1647_v17 = vpop.eup %1646 }
 0x9da   :  { %v647_v25 = vmul.f32 %v1647_v17, %v645_v42  ;;  %v633_v26 = vmul.f32 %v1647_v17, %v631_v24 }
 0xa3d   :  { %v649_v19 = vpop.permute.xlu0 %648  ;;  %v636_v20 = vpop.permute.xlu1 %635 }
 0xa3e   :  { %v651_v21 = vmul.f32 %v1647_v17, %v649_v19  ;;  %v638_v23 = vmul.f32 %v1647_v17, %v636_v20 }
 0xa40   :  { %653 = vrot.lane.b32.xlu0 %v651_v21, %s1754_s27  ;;  %640 = vrot.lane.b32.xlu1 %v638_v23, %s1754_s27 }
 0xab2   :  { %v654_v27 = vpop.permute.xlu0 %653  ;;  %v641_v28 = vpop.permute.xlu1 %640 }
 0xab3   :  { %v656_v29 = vadd.f32 %v654_v27, %v647_v25  ;;  %v643_v30 = vadd.f32 %v641_v28, %v633_v26 }
 0xab5   :  { %1648 = vtanh.f32 %v656_v29  ;;  %v775_v55 = vrot.slane %v656_v29, 6  ;;  %v761_v56 = vrot.slane %v643_v30, 6 }
 0xab6   :  { %1650 = vtanh.f32 %v643_v30 }
 0xabf   :  { %v1649_v31 = vpop.eup %1648 }
 0xac0   :  { %v1651_v32 = vpop.eup %1650  ;;  %665 = vrot.lane.b32.xlu0 %v1649_v31, %s1754_s27 }
 0xac1   :  { %659 = vrot.lane.b32.xlu1 %v1651_v32, %s1754_s27 }
 0xb32   :  { %v666_v33 = vpop.permute.xlu0 %665 }
 0xb33   :  { %v668_v34 = vmul.f32 %v1647_v17, %v666_v33  ;;  %v660_v35 = vpop.permute.xlu1 %659 }
 0xb34   :  { %v662_v36 = vmul.f32 %v1647_v17, %v660_v35 }
 0xb35   :  { %674 = vrot.lane.b32.xlu0 %v668_v34, %s1752_s0 }
 0xb36   :  { %670 = vrot.lane.b32.xlu1 %v662_v36, %s1755_s28 }
 0xba7   :  { %v675_v37 = vpop.permute.xlu0 %674 }
 0xba8   :  { %v671_v38 = vpop.permute.xlu1 %670 }
 0xba9   :  { %v677_v39 = vsel %vm278_vm8, %v671_v38, %v675_v37 }
 0xbaa   :  { %v679_v40 = vrot.slane %v677_v39, 6 }
 0xbac   :  { %1471 = vmatmul.mubr.msk.f32.vlgmr.msra.gmra.mrb[2].mxu0 %vm156_vm9, %v679_v40 }
 0xbad   :  { %1579 = vmatpush3.bf16.msra.mxu0 %v1791_v15  ;;  %1492 = vmatprep.mubr.msk.f32.mxu0 %vm1750_vm0, %v1751_v22 }
 0xbae   :  { %1580 = vmatprep.subr.bf16.mxu0 %v1748_v8 }
 0xbb1   :  { %1582 = vmatpush3.bf16.msra.mxu0 %v1794_v18 }
 0xbb2   :  { %1589 = vmatprep.subr.bf16.mxu0 %v1748_v8 }
 0xc7f   :  { %v748_v43 = vpop.f32.mrb[2].mxu0 }
 0xc80   :  { %v752_v44 = vadd.f32 %v1817_v41, %v748_v43  ;;  %v1472_v45 = vpop.f32.mrb[3].mxu0 }
 0xc82   :  { %1652 = vtanh.f32 %v752_v44  ;;  %v1319_v47 = vmul.f32 -1.442695, %v752_v44 }
 0xc84   :  { %1654 = vpow2.f32 %v1319_v47 }
 0xc8c   :  { %v1653_v46 = vpop.eup %1652 }
 0xc8d   :  { %778 = vrot.lane.b32.xlu0 %v1653_v46, %s1752_s0  ;;  %765 = vrot.lane.b32.xlu1 %v1653_v46, %s1753_s1 }
 0xc8e   :  { %v1655_v48 = vpop.eup %1654 }
 0xc8f   :  { %v756_v49 = vadd.f32 1.0, %v1655_v48 }
 0xc91   :  { %1656 = vrcp.f32 %v756_v49 }
 0xc9b   :  { %v1657_v50 = vpop.eup %1656 }
 0xc9c   :  { %v777_v57 = vmul.f32 %v1657_v50, %v775_v55  ;;  %v763_v58 = vmul.f32 %v1657_v50, %v761_v56 }
 0xcff   :  { %v779_v51 = vpop.permute.xlu0 %778  ;;  %v766_v52 = vpop.permute.xlu1 %765 }
 0xd00   :  { %v781_v53 = vmul.f32 %v1657_v50, %v779_v51  ;;  %v768_v54 = vmul.f32 %v1657_v50, %v766_v52 }
 0xd02   :  { %783 = vrot.lane.b32.xlu0 %v781_v53, %s1754_s27  ;;  %770 = vrot.lane.b32.xlu1 %v768_v54, %s1754_s27 }
 0xd74   :  { %v784_v59 = vpop.permute.xlu0 %783  ;;  %v771_v60 = vpop.permute.xlu1 %770 }
 0xd75   :  { %v786_v61 = vadd.f32 %v784_v59, %v777_v57  ;;  %v773_v62 = vadd.f32 %v771_v60, %v763_v58 }
 0xd77   :  { %1658 = vtanh.f32 %v786_v61  ;;  %v907_v23 = vrot.slane %v786_v61, 6  ;;  %v893_v42 = vrot.slane %v773_v62, 6 }
 0xd78   :  { %1660 = vtanh.f32 %v773_v62 }
 0xd81   :  { %v1659_v63 = vpop.eup %1658 }
 0xd82   :  { %v1661_v0 = vpop.eup %1660  ;;  %795 = vrot.lane.b32.xlu0 %v1659_v63, %s1754_s27 }
 0xd83   :  { %789 = vrot.lane.b32.xlu1 %v1661_v0, %s1754_s27 }
 0xdf4   :  { %v796_v1 = vpop.permute.xlu0 %795 }
 0xdf5   :  { %v798_v2 = vmul.f32 %v1657_v50, %v796_v1  ;;  %v790_v3 = vpop.permute.xlu1 %789 }
 0xdf6   :  { %v792_v4 = vmul.f32 %v1657_v50, %v790_v3 }
 0xdf7   :  { %804 = vrot.lane.b32.xlu0 %v798_v2, %s1752_s0 }
 0xdf8   :  { %800 = vrot.lane.b32.xlu1 %v792_v4, %s1755_s28 }
 0xe69   :  { %v805_v5 = vpop.permute.xlu0 %804 }
 0xe6a   :  { %v801_v6 = vpop.permute.xlu1 %800 }
 0xe6b   :  { %v807_v7 = vsel %vm278_vm8, %v801_v6, %v805_v5 }
 0xe6c   :  { %1482 = vmatmul.mubr.msk.f32.vlgmr.msra.gmra.mrb[8].mxu1 %vm156_vm9, %v807_v7 }
 0xe6d   :  { %1585 = vmatpush3.bf16.msra.mxu1 %v1791_v15  ;;  %1503 = vmatprep.mubr.msk.f32.mxu1 %vm1750_vm0, %v1751_v22 }
 0xe6e   :  { %1586 = vmatprep.subr.bf16.mxu1 %v1748_v8 }
 0xe71   :  { %1588 = vmatpush3.bf16.msra.mxu1 %v1794_v18 }
 0xf3f   :  { %v877_v9 = vpop.f32.mrb[8].mxu1 }
 0xf40   :  { %v882_v10 = vrot.slane %v877_v9, 6  ;;  %v1483_v11 = vpop.f32.mrb[9].mxu1 }
 0xf42   :  { %v884_v12 = vadd.f32 %v1817_v41, %v882_v10 }
 0xf44   :  { %1662 = vtanh.f32 %v884_v12  ;;  %v1321_v14 = vmul.f32 -1.442695, %v884_v12 }
 0xf46   :  { %1664 = vpow2.f32 %v1321_v14 }
 0xf4e   :  { %v1663_v13 = vpop.eup %1662 }
 0xf4f   :  { %910 = vrot.lane.b32.xlu0 %v1663_v13, %s1752_s0  ;;  %897 = vrot.lane.b32.xlu1 %v1663_v13, %s1753_s1 }
 0xf50   :  { %v1665_v15 = vpop.eup %1664 }
 0xf51   :  { %v888_v16 = vadd.f32 1.0, %v1665_v15 }
 0xf53   :  { %1666 = vrcp.f32 %v888_v16 }
 0xf5d   :  { %v1667_v17 = vpop.eup %1666 }
 0xf5e   :  { %v909_v24 = vmul.f32 %v1667_v17, %v907_v23  ;;  %v895_v25 = vmul.f32 %v1667_v17, %v893_v42 }
 0xfc1   :  { %v911_v19 = vpop.permute.xlu0 %910  ;;  %v898_v20 = vpop.permute.xlu1 %897 }
 0xfc2   :  { %v913_v18 = vmul.f32 %v1667_v17, %v911_v19  ;;  %v900_v21 = vmul.f32 %v1667_v17, %v898_v20 }
 0xfc4   :  { %915 = vrot.lane.b32.xlu0 %v913_v18, %s1754_s27  ;;  %902 = vrot.lane.b32.xlu1 %v900_v21, %s1754_s27 }
0x1036   :  { %v916_v26 = vpop.permute.xlu0 %915  ;;  %v903_v27 = vpop.permute.xlu1 %902 }
0x1037   :  { %v918_v28 = vadd.f32 %v916_v26, %v909_v24  ;;  %v905_v29 = vadd.f32 %v903_v27, %v895_v25 }
0x1039   :  { %1668 = vtanh.f32 %v918_v28  ;;  %v1040_v54 = vrot.slane %v918_v28, 6  ;;  %v1026_v55 = vrot.slane %v905_v29, 6 }
0x103a   :  { %1670 = vtanh.f32 %v905_v29  ;;  %v43_v29 = vld [vmem:[#allocation2 + $0x88] sm:$0xff] }
0x1043   :  { %v1669_v30 = vpop.eup %1668 }
0x1044   :  { %v1671_v31 = vpop.eup %1670  ;;  %927 = vrot.lane.b32.xlu0 %v1669_v30, %s1754_s27  ;;  %v44_v30 = vld [vmem:[#allocation2 + $0x90] sm:$0xff] }
0x1045   :  { %921 = vrot.lane.b32.xlu1 %v1671_v31, %s1754_s27  ;;  %v1590_v31 = vpack.c.bf16 %v44_v30, %v43_v29 }
0x10b6   :  { %v928_v32 = vpop.permute.xlu0 %927 }
0x10b7   :  { %v930_v33 = vmul.f32 %v1667_v17, %v928_v32  ;;  %v922_v34 = vpop.permute.xlu1 %921 }
0x10b8   :  { %v924_v35 = vmul.f32 %v1667_v17, %v922_v34  ;;  %v45_v34 = vld [vmem:[#allocation2 + $0x98] sm:$0xff] }
0x10b9   :  { %936 = vrot.lane.b32.xlu0 %v930_v33, %s1752_s0 }
0x10ba   :  { %932 = vrot.lane.b32.xlu1 %v924_v35, %s1755_s28  ;;  %v46_v35 = vld [vmem:[#allocation2 + $0xa0] sm:$0xff] }
0x112b   :  { %v937_v36 = vpop.permute.xlu0 %936 }
0x112c   :  { %v933_v37 = vpop.permute.xlu1 %932 }
0x112d   :  { %v939_v38 = vsel %vm278_vm8, %v933_v37, %v937_v36  ;;  %v1593_v36 = vpack.c.bf16 %v46_v35, %v45_v34 }
0x112e   :  { %v941_v39 = vrot.slane %v939_v38, 2 }
0x1130   :  { %1493 = vmatmul.mubr.msk.f32.vlgmr.msra.gmra.mrb[4].mxu0 %vm156_vm9, %v941_v39 }
0x1131   :  { %1514 = vmatprep.mubr.msk.f32.mxu0 %vm1750_vm0, %v1751_v22  ;;  %1591 = vmatpush3.bf16.msra.mxu0 %v1590_v31 }
0x1132   :  { %1592 = vmatprep.subr.bf16.mxu0 %v1748_v8 }
0x1135   :  { %1594 = vmatpush3.bf16.msra.mxu0 %v1593_v36 }
0x1203   :  { %v1010_v40 = vpop.f32.mrb[4].mxu0 }
0x1204   :  { %v1015_v43 = vrot.slane %v1010_v40, 4  ;;  %v1494_v44 = vpop.f32.mrb[5].mxu0 }
0x1206   :  { %v1017_v45 = vadd.f32 %v1817_v41, %v1015_v43 }
0x1208   :  { %1672 = vtanh.f32 %v1017_v45  ;;  %v1323_v47 = vmul.f32 -1.442695, %v1017_v45 }
0x120a   :  { %1674 = vpow2.f32 %v1323_v47 }
0x1212   :  { %v1673_v46 = vpop.eup %1672 }
0x1213   :  { %1043 = vrot.lane.b32.xlu0 %v1673_v46, %s1752_s0  ;;  %1030 = vrot.lane.b32.xlu1 %v1673_v46, %s1753_s1  ;;  %v1326_v46 = vld [vmem:[#allocation2 + $0xa8] ss:$0 sm:$0xff] }
0x1214   :  { %v1675_v48 = vpop.eup %1674 }
0x1215   :  { %v1021_v49 = vadd.f32 1.0, %v1675_v48 }
0x1217   :  { %1676 = vrcp.f32 %v1021_v49 }
0x1221   :  { %v1677_v50 = vpop.eup %1676 }
0x1222   :  { %v1042_v56 = vmul.f32 %v1677_v50, %v1040_v54  ;;  %v1028_v57 = vmul.f32 %v1677_v50, %v1026_v55 }
0x1285   :  { %v1044_v51 = vpop.permute.xlu0 %1043  ;;  %v1031_v52 = vpop.permute.xlu1 %1030 }
0x1286   :  { %v1046_v22 = vmul.f32 %v1677_v50, %v1044_v51  ;;  %v1033_v53 = vmul.f32 %v1677_v50, %v1031_v52 }
0x1288   :  { %1048 = vrot.lane.b32.xlu0 %v1046_v22, %s1754_s27  ;;  %1035 = vrot.lane.b32.xlu1 %v1033_v53, %s1754_s27 }
0x12fa   :  { %v1049_v58 = vpop.permute.xlu0 %1048  ;;  %v1036_v59 = vpop.permute.xlu1 %1035 }
0x12fb   :  { %v1051_v60 = vadd.f32 %v1049_v58, %v1042_v56  ;;  %v1038_v61 = vadd.f32 %v1036_v59, %v1028_v57 }
0x12fd   :  { %1678 = vtanh.f32 %v1051_v60  ;;  %v1159_v23 = vrot.slane %v1038_v61, 6 }
0x12fe   :  { %1680 = vtanh.f32 %v1038_v61 }
0x1307   :  { %v1679_v62 = vpop.eup %1678 }
0x1308   :  { %v1681_v63 = vpop.eup %1680  ;;  %1060 = vrot.lane.b32.xlu0 %v1679_v62, %s1754_s27 }
0x1309   :  { %1054 = vrot.lane.b32.xlu1 %v1681_v63, %s1754_s27 }
0x137a   :  { %v1061_v0 = vpop.permute.xlu0 %1060 }
0x137b   :  { %v1063_v1 = vmul.f32 %v1677_v50, %v1061_v0  ;;  %v1055_v2 = vpop.permute.xlu1 %1054 }
0x137c   :  { %v1057_v3 = vmul.f32 %v1677_v50, %v1055_v2 }
0x137d   :  { %1069 = vrot.lane.b32.xlu0 %v1063_v1, %s1752_s0 }
0x137e   :  { %1065 = vrot.lane.b32.xlu1 %v1057_v3, %s1755_s28 }
0x13ef   :  { %v1070_v4 = vpop.permute.xlu0 %1069 }
0x13f0   :  { %v1066_v5 = vpop.permute.xlu1 %1065 }
0x13f1   :  { %v1072_v6 = vsel %vm278_vm8, %v1066_v5, %v1070_v4 }
0x13f2   :  { %v1074_v7 = vrot.slane %v1072_v6, 4 }
0x13f4   :  { %1504 = vmatmul.mubr.msk.f32.vlgmr.msra.gmra.mrb[10].mxu1 %vm156_vm9, %v1074_v7 }
0x14c7   :  { %v1143_v9 = vpop.f32.mrb[10].mxu1 }
0x14c8   :  { %v1148_v10 = vrot.slane %v1143_v9, 2  ;;  %v1505_v11 = vpop.f32.mrb[11].mxu1 }
0x14ca   :  { %v1150_v12 = vadd.f32 %v1817_v41, %v1148_v10  ;;  %v1173_v41 = vrot.slane %v1051_v60, 6 }
0x14cc   :  { %1682 = vtanh.f32 %v1150_v12  ;;  %v1325_v14 = vmul.f32 -1.442695, %v1150_v12 }
0x14ce   :  { %1684 = vpow2.f32 %v1325_v14 }
0x14d6   :  { %v1683_v13 = vpop.eup %1682 }
0x14d7   :  { %1176 = vrot.lane.b32.xlu0 %v1683_v13, %s1752_s0  ;;  %1163 = vrot.lane.b32.xlu1 %v1683_v13, %s1753_s1 }
0x14d8   :  { %v1685_v15 = vpop.eup %1684 }
0x14d9   :  { %v1154_v16 = vadd.f32 1.0, %v1685_v15 }
0x14db   :  { %1686 = vrcp.f32 %v1154_v16 }
0x14e5   :  { %v1687_v17 = vpop.eup %1686 }
0x14e6   :  { %v1175_v42 = vmul.f32 %v1687_v17, %v1173_v41  ;;  %v1161_v24 = vmul.f32 %v1687_v17, %v1159_v23 }
0x1549   :  { %v1177_v19 = vpop.permute.xlu0 %1176  ;;  %v1164_v20 = vpop.permute.xlu1 %1163 }
0x154a   :  { %v1179_v18 = vmul.f32 %v1687_v17, %v1177_v19  ;;  %v1166_v21 = vmul.f32 %v1687_v17, %v1164_v20 }
0x154c   :  { %1181 = vrot.lane.b32.xlu0 %v1179_v18, %s1754_s27  ;;  %1168 = vrot.lane.b32.xlu1 %v1166_v21, %s1754_s27 }
0x15be   :  { %v1182_v25 = vpop.permute.xlu0 %1181  ;;  %v1169_v26 = vpop.permute.xlu1 %1168 }
0x15bf   :  { %v1184_v27 = vadd.f32 %v1182_v25, %v1175_v42  ;;  %v1171_v28 = vadd.f32 %v1169_v26, %v1161_v24 }
0x15c1   :  { %1688 = vtanh.f32 %v1184_v27 }
0x15c2   :  { %1690 = vtanh.f32 %v1171_v28 }
0x15cb   :  { %v1689_v32 = vpop.eup %1688 }
0x15cc   :  { %v1691_v33 = vpop.eup %1690  ;;  %1193 = vrot.lane.b32.xlu0 %v1689_v32, %s1754_s27 }
0x15cd   :  { %1187 = vrot.lane.b32.xlu1 %v1691_v33, %s1754_s27 }
0x163e   :  { %v1194_v37 = vpop.permute.xlu0 %1193 }
0x163f   :  { %v1196_v38 = vmul.f32 %v1687_v17, %v1194_v37  ;;  %v1188_v39 = vpop.permute.xlu1 %1187 }
0x1640   :  { %v1190_v40 = vmul.f32 %v1687_v17, %v1188_v39 }
0x1641   :  { %1202 = vrot.lane.b32.xlu0 %v1196_v38, %s1752_s0 }
0x1642   :  { %1198 = vrot.lane.b32.xlu1 %v1190_v40, %s1755_s28 }
0x16b3   :  { %v1203_v43 = vpop.permute.xlu0 %1202 }
0x16b4   :  { %v1199_v8 = vpop.permute.xlu1 %1198 }
0x16b5   :  { %v1205_v44 = vsel %vm278_vm8, %v1199_v8, %v1203_v43 }
0x16b6   :  { %v1211_v45 = vrot.slane %v1205_v44, 6 }
0x16b8   :  { %1515 = vmatmul.mubr.msk.f32.vlgmr.msra.gmra.mrb[6].mxu0 %vm156_vm9, %v1211_v45 }
0x178b   :  { %v1280_v47 = vpop.f32.mrb[6].mxu0 }
0x178c   :  { %v1281_v48 = vadd.f32 %v1326_v46, %v1280_v47  ;;  %v1516_v49 = vpop.f32.mrb[7].mxu0 }
0x178e   :  { %v1328_v50 = vmul.f32 -1.442695, %v1281_v48 }
0x1790   :  { %1692 = vpow2.f32 %v1328_v50 }
0x179a   :  { %v1693_v51 = vpop.eup %1692 }
0x179b   :  { %v1287_v52 = vadd.f32 1.0, %v1693_v51 }
0x179d   :  { %1694 = vrcp.f32 %v1287_v52 }
0x17a7   :  { %v1695_v22 = vpop.eup %1694 }
0x17a8   :  { %1291 = vst.msk [vmem:[#allocation5] sm:$0x3] %vm1290_vm10, %v1695_v22 }
0x17a9   :  { %1729 = shalt.err (!%p1726_p12)
}
0x17aa   :  { %s1730_s6 = scalar_lea.hbm %s1955_s2, 32 }
0x17ab   :  { %p1731_p13 = scmp.ne.s32.totalorder %s1955_s2, %s1730_s6  ;;  %p1734_p0 = scmp.lt.u32.totalorder %s1730_s6, %s1955_s2 }
0x17ad   :  { %p1736_p1 = pnand %p1734_p0, %p1731_p13 }
0x17af   :  { %1739 = shalt.err (!%p1736_p1)
}
0x17b0   :  { %1301 = dma.vmem_to_hbm [thread:$0]  %s1299_s30, 32, %s1955_s2, [#allocation4]  }
0x17b1   :  { %1742 = dma.done.wait [#allocation4], 32  }
0x17b2   :  { %1743 = vsyncadd [#allocation4], 4294967264 }
0x17b3   :  { %1305 = vsyncpa [#allocation3], 1 }
0x17b4   :  { %1306 = vsyncpa [#allocation4], 1 }

</bundles_post_ra>
